<compile_context>
chip_gen: v7x
topology: tpu7x:2x2x1
jax: 0.10.0
libtpu: 0.0.40
codegen_flags: <defaults>
</compile_context>

<pallas_src>
import functools

import jax
import jax.numpy as jnp
from jax.experimental import pallas as pl
from jax.experimental.pallas import tpu as pltpu


def _apply_activation(h, name):
    if name == "relu":
        return jnp.maximum(h, 0.0)
    if name == "tanh":
        return jnp.tanh(h)
    if name == "sigmoid":
        return jax.nn.sigmoid(h)
    raise ValueError(f"unknown activation: {name}")


def mlp_kernel(x_ref, w1_ref, b1_ref, w2_ref, b2_ref, o_ref, *, activation):
    # fc1: (TB, D) @ (D, H) + (1, H)
    h = jnp.dot(x_ref[...], w1_ref[...], preferred_element_type=jnp.float32)
    h = h + b1_ref[...]
    # configurable activation (Model1Activation.forward uses self.activation)
    h = _apply_activation(h, activation)
    # fc2: (TB, H) @ (H, C) + (1, C)   -- exactly C output columns, no padding
    out = jnp.dot(h, w2_ref[...], preferred_element_type=jnp.float32)
    out = out + b2_ref[...]
    o_ref[...] = out.astype(o_ref.dtype)


def prepare_params(w1, b1, w2, b2):
    """One-time parameter prep (call at parameter-load time, NOT per forward).

    w1: (input_dim, 32)  -- transposed PyTorch fc1.weight
    b1: (32,)
    w2: (32, num_classes) -- transposed PyTorch fc2.weight
    b2: (num_classes,)
    """
    H = w1.shape[1]
    C = w2.shape[1]
    return (
        jnp.asarray(w1),
        jnp.asarray(b1).reshape(1, H),
        jnp.asarray(w2),
        jnp.asarray(b2).reshape(1, C),
    )


def _round_up(n, m):
    return ((n + m - 1) // m) * m


def model1_activation_forward(x, params, *, activation="relu", tb=2048):
    """Pallas equivalent of Model1Activation.forward.

    x:      (B, input_dim) float32
    params: output of prepare_params()
    returns (B, num_classes) float32
    """
    w1, b1_2d, w2, b2_2d = params
    B, D = x.shape
    H = w1.shape[1]
    C = w2.shape[1]

    # Batch tile selection:
    #  - small batches: one block covering the exact batch (full-dim block is
    #    legal even when B % 8 != 0),
    #  - large batches: TB is a multiple of 8, capped at `tb`, chosen so the
    #    grid has >= 2 steps (v7x has 2 TensorCores; "parallel" lets the
    #    runtime shard the batch axis across them). The partial last block is
    #    masked by Pallas on writeback -- no wrapper-side x padding copy.
    if B <= 256:
        TB = B
    else:
        TB = min(tb, _round_up(pl.cdiv(B, 2), 8))
    grid = (pl.cdiv(B, TB),)

    kernel = functools.partial(mlp_kernel, activation=activation)

    return pl.pallas_call(
        kernel,
        out_shape=jax.ShapeDtypeStruct((B, C), x.dtype),
        grid=grid,
        in_specs=[
            # x: tiled along batch
            pl.BlockSpec((TB, D), lambda i: (i, 0)),
            # weights/biases: single block, resident in VMEM across all steps
            pl.BlockSpec((D, H), lambda i: (0, 0)),
            pl.BlockSpec((1, H), lambda i: (0, 0)),
            pl.BlockSpec((H, C), lambda i: (0, 0)),
            pl.BlockSpec((1, C), lambda i: (0, 0)),
        ],
        out_specs=pl.BlockSpec((TB, C), lambda i: (i, 0)),
        compiler_params=pltpu.CompilerParams(
            dimension_semantics=("parallel",),
        ),
    )(x, w1, b1_2d, w2, b2_2d)


def _reference(x, w1, b1, w2, b2, activation):
    h = x @ w1 + b1
    if activation == "relu":
        h = jnp.maximum(h, 0.0)
    elif activation == "tanh":
        h = jnp.tanh(h)
    elif activation == "sigmoid":
        h = jax.nn.sigmoid(h)
    return h @ w2 + b2


if __name__ == "__main__":
    # Shapes consistent with the module: input_dim=16, hidden=32 (fixed by
    # Model1), num_classes=4, batch=8.
    batch, input_dim, hidden, num_classes = 8, 16, 32, 4

    key = jax.random.PRNGKey(0)
    kx, kw1, kb1, kw2, kb2, kx_big = jax.random.split(key, 6)

    x = jax.random.normal(kx, (batch, input_dim), dtype=jnp.float32)
    # Deterministic parameter init (Kaiming-uniform-ish bounds like nn.Linear).
    lim1 = 1.0 / jnp.sqrt(input_dim)
    lim2 = 1.0 / jnp.sqrt(hidden)
    w1 = jax.random.uniform(kw1, (input_dim, hidden), jnp.float32, -lim1, lim1)
    b1 = jax.random.uniform(kb1, (hidden,), jnp.float32, -lim1, lim1)
    w2 = jax.random.uniform(kw2, (hidden, num_classes), jnp.float32, -lim2, lim2)
    b2 = jax.random.uniform(kb2, (num_classes,), jnp.float32, -lim2, lim2)

    params = prepare_params(w1, b1, w2, b2)  # hoisted out of per-call path

    # Small-batch check (single grid step, block == full batch), relu.
    out = model1_activation_forward(x, params, activation="relu")
    out = jax.block_until_ready(out)
    ref = _reference(x, w1, b1, w2, b2, "relu")
    assert out.shape == (batch, num_classes)
    assert jnp.allclose(out, ref, atol=1e-5, rtol=1e-5)

    # Larger batch with a non-divisible tile: exercises the multi-step grid
    # AND the masked partial last block (garbage tail rows discarded), with a
    # saturating activation (tanh) to verify no NaN leakage into kept rows.
    big_b = 1000
    x_big = jax.random.normal(kx_big, (big_b, input_dim), dtype=jnp.float32)
    out_big = model1_activation_forward(x_big, params, activation="tanh")
    out_big = jax.block_until_ready(out_big)
    ref_big = _reference(x_big, w1, b1, w2, b2, "tanh")
    assert out_big.shape == (big_b, num_classes)
    assert jnp.all(jnp.isfinite(out_big))
    assert jnp.allclose(out_big, ref_big, atol=1e-5, rtol=1e-5)

    print("KERNEL_OK")
</pallas_src>

<mosaic_0001>
module attributes {stable_mosaic.version = 11 : i64} {
  func.func @mlp_kernel(%arg0: i32, %arg1: memref<8x16xf32, #tpu.memory_space<vmem>>, %arg2: memref<16x32xf32, #tpu.memory_space<vmem>>, %arg3: memref<1x32xf32, #tpu.memory_space<vmem>>, %arg4: memref<32x4xf32, #tpu.memory_space<vmem>>, %arg5: memref<1x4xf32, #tpu.memory_space<vmem>>, %arg6: memref<8x4xf32, #tpu.memory_space<vmem>>) attributes {dimension_semantics = [#tpu.dimension_semantics<parallel>], iteration_bounds = array<i64: 1>, scalar_prefetch = 0 : i64, scratch_operands = 0 : i64, tpu.core_type = #tpu.core_type<tc>, window_params = [{transform_indices = @transform_0, window_bounds = array<i64: 8, 16>}, {pipeline_mode = #tpu.pipeline_mode<synchronous>, transform_indices = @transform_1, window_bounds = array<i64: 16, 32>}, {pipeline_mode = #tpu.pipeline_mode<synchronous>, transform_indices = @transform_2, window_bounds = array<i64: 1, 32>}, {pipeline_mode = #tpu.pipeline_mode<synchronous>, transform_indices = @transform_3, window_bounds = array<i64: 32, 4>}, {pipeline_mode = #tpu.pipeline_mode<synchronous>, transform_indices = @transform_4, window_bounds = array<i64: 1, 4>}, {transform_indices = @transform_5, window_bounds = array<i64: 8, 4>}]} {
    %c0 = arith.constant 0 : index
    %c0_0 = arith.constant 0 : index
    %0 = vector.load %arg1[%c0, %c0_0] : memref<8x16xf32, #tpu.memory_space<vmem>>, vector<8x16xf32>
    %c0_1 = arith.constant 0 : index
    %c0_2 = arith.constant 0 : index
    %1 = vector.load %arg2[%c0_1, %c0_2] : memref<16x32xf32, #tpu.memory_space<vmem>>, vector<16x32xf32>
    %cst = arith.constant dense<0.000000e+00> : vector<8x32xf32>
    %2 = tpu.matmul %0, %1, %cst {dimension_numbers = #tpu.dot_dimension_numbers<[1], [0], [0], [1], [0, 0, 1, 1], [], []>} : vector<8x16xf32>, vector<16x32xf32>, vector<8x32xf32> -> vector<8x32xf32>
    %c0_3 = arith.constant 0 : index
    %c0_4 = arith.constant 0 : index
    %3 = vector.load %arg3[%c0_3, %c0_4] : memref<1x32xf32, #tpu.memory_space<vmem>>, vector<1x32xf32>
    %4 = vector.broadcast %3 : vector<1x32xf32> to vector<8x32xf32>
    %5 = arith.addf %2, %4 : vector<8x32xf32>
    %cst_5 = arith.constant 0.000000e+00 : f32
    %6 = vector.broadcast %cst_5 : f32 to vector<8x32xf32>
    %7 = arith.maximumf %5, %6 : vector<8x32xf32>
    %c0_6 = arith.constant 0 : index
    %c0_7 = arith.constant 0 : index
    %8 = vector.load %arg4[%c0_6, %c0_7] : memref<32x4xf32, #tpu.memory_space<vmem>>, vector<32x4xf32>
    %cst_8 = arith.constant dense<0.000000e+00> : vector<8x4xf32>
    %9 = tpu.matmul %7, %8, %cst_8 {dimension_numbers = #tpu.dot_dimension_numbers<[1], [0], [0], [1], [0, 0, 1, 1], [], []>} : vector<8x32xf32>, vector<32x4xf32>, vector<8x4xf32> -> vector<8x4xf32>
    %c0_9 = arith.constant 0 : index
    %c0_10 = arith.constant 0 : index
    %10 = vector.load %arg5[%c0_9, %c0_10] : memref<1x4xf32, #tpu.memory_space<vmem>>, vector<1x4xf32>
    %11 = vector.broadcast %10 : vector<1x4xf32> to vector<8x4xf32>
    %12 = arith.addf %9, %11 : vector<8x4xf32>
    %c0_11 = arith.constant 0 : index
    %c0_12 = arith.constant 0 : index
    %13 = vector.load %arg6[%c0_11, %c0_12] : memref<8x4xf32, #tpu.memory_space<vmem>>, vector<8x4xf32>
    tpu.vector_store %arg6[%c0_11, %c0_12], %12 {strides = array<i32>} : memref<8x4xf32, #tpu.memory_space<vmem>>, vector<8x4xf32>,
    return
  }
  func.func @transform_0(%arg0: i32) -> (i32, i32) {
    %c0_i32 = arith.constant 0 : i32
    %c0_i32_0 = arith.constant 0 : i32
    return %arg0, %c0_i32 : i32, i32
  }
  func.func @transform_1(%arg0: i32) -> (i32, i32) {
    %c0_i32 = arith.constant 0 : i32
    %c0_i32_0 = arith.constant 0 : i32
    %c0_i32_1 = arith.constant 0 : i32
    return %c0_i32, %c0_i32_0 : i32, i32
  }
  func.func @transform_2(%arg0: i32) -> (i32, i32) {
    %c0_i32 = arith.constant 0 : i32
    %c0_i32_0 = arith.constant 0 : i32
    %c0_i32_1 = arith.constant 0 : i32
    return %c0_i32, %c0_i32_0 : i32, i32
  }
  func.func @transform_3(%arg0: i32) -> (i32, i32) {
    %c0_i32 = arith.constant 0 : i32
    %c0_i32_0 = arith.constant 0 : i32
    %c0_i32_1 = arith.constant 0 : i32
    return %c0_i32, %c0_i32_0 : i32, i32
  }
  func.func @transform_4(%arg0: i32) -> (i32, i32) {
    %c0_i32 = arith.constant 0 : i32
    %c0_i32_0 = arith.constant 0 : i32
    %c0_i32_1 = arith.constant 0 : i32
    return %c0_i32, %c0_i32_0 : i32, i32
  }
  func.func @transform_5(%arg0: i32) -> (i32, i32) {
    %c0_i32 = arith.constant 0 : i32
    %c0_i32_0 = arith.constant 0 : i32
    return %arg0, %c0_i32 : i32, i32
  }
}

</mosaic_0001>

<bundles_post_ra>
// kernel: tpu_custom_call.1
= control target key start
LH: loop header
LB: loop body
LE: loop exit
PB: predicated region body
PF: predicated region fallthrough
CT: control target
= control target key end

     0   :  { %v238_v0 = vmov 0.0|0.0   ;;  %vm239_vm0 = vmmov 0   ;;  %v240_v3 = vmov 0.0   ;;  %vm30_vm1 = vcmask 130048   ;;  %s301_s1 = inlined_call_operand.vmem [shape: f32[16,32], index: 1, kind: input, shape index: {}]   ;;  %s302_s3 = inlined_call_operand.vmem [shape: f32[32,4], index: 3, kind: input, shape index: {}]   ;;  %s303_s0 = inlined_call_operand.vmem [shape: f32[8,16], index: 0, kind: input, shape index: {}]   ;;  %s304_s2 = inlined_call_operand.vmem [shape: f32[1,32], index: 2, kind: input, shape index: {}]   ;;  %s305_s4 = inlined_call_operand.vmem [shape: f32[1,4], index: 4, kind: input, shape index: {}]   ;;  %s306_s5 = inlined_call_operand.vmem [shape: f32[8,4], index: 5, kind: output, shape index: {}]  }
   0x1   :  { %226 = vmatprep.subr.bf16.mxu0 %v238_v0  ;;  %v21_v1 = vld [vmem:[%s301_s1] sm:$0xff]  ;;  %v22_v2 = vld [vmem:[%s301_s1 + $0x8] sm:$0xff]  ;;  %212 = vmatprep.mubr.msk.f32.mxu0 %vm239_vm0, %v240_v3  ;;  %v107_v9 = vld [vmem:[%s302_s3 + $0x10] sm:$0xff]  ;;  %vm116_vm2 = vcmask 261120   ;;  %vm190_vm3 = vcmask 31744  }
   0x2   :  { %v227_v4 = vpack.c.bf16 %v22_v2, %v21_v1  ;;  %229 = vmatprep.subr.bf16.mxu1 %v238_v0  ;;  %v105_v5 = vld [vmem:[%s302_s3] sm:$0xff]  ;;  %v106_v6 = vld [vmem:[%s302_s3 + $0x8] sm:$0xff]  ;;  %223 = vmatprep.mubr.msk.f32.mxu1 %vm239_vm0, %v240_v3  ;;  %v108_v10 = vld [vmem:[%s302_s3 + $0x18] sm:$0xff] }
   0x3   :  { %v230_v7 = vpack.c.bf16 %v106_v6, %v105_v5  ;;  %v20_v8 = vld [vmem:[%s303_s0] sm:$0xff]  ;;  %v233_v11 = vpack.c.bf16 %v108_v10, %v107_v9 }
   0x4   :  { %228 = vmatpush3.bf16.msra.mxu0 %v227_v4  ;;  %v196_v12 = vld [vmem:[%s304_s2] ss:$0 sm:$0xff] }
   0x5   :  { %231 = vmatpush3.bf16.msra.mxu1 %v230_v7  ;;  %v198_v17 = vld [vmem:[%s305_s4] ss:$0 sm:$0xff] }
   0x6   :  { %232 = vmatprep.subr.bf16.mxu1 %v238_v0 }
   0x7   :  { %213 = vmatmul.mubr.msk.f32.vlgmr.msra.gmra.mrb[0].mxu0 %vm30_vm1, %v20_v8 }
   0x9   :  { %234 = vmatpush3.bf16.msra.mxu1 %v233_v11 }
  0xda   :  { %v100_v13 = vpop.f32.mrb[0].mxu0 }
  0xdb   :  { %v101_v14 = vadd.f32 %v196_v12, %v100_v13  ;;  %v214_v15 = vpop.f32.mrb[1].mxu0 }
  0xdd   :  { %v104_v16 = vmax.f32 %v101_v14, 0.0 }
  0xdf   :  { %224 = vmatmul.mubr.msk.f32.vlgmr.msra.gmra.mrb[0].mxu1 %vm116_vm2, %v104_v16 }
 0x1b2   :  { %v186_v18 = vpop.f32.mrb[0].mxu1 }
 0x1b3   :  { %v187_v19 = vadd.f32 %v198_v17, %v186_v18  ;;  %v225_v20 = vpop.f32.mrb[1].mxu1 }
 0x1b5   :  { %191 = vst.msk [vmem:[%s306_s5] sm:$0xff] %vm190_vm3, %v187_v19 }

</bundles_post_ra>
